<compile_context>
chip_gen: v6e
topology: v6e:2x2x1
jax: 0.10.0
libtpu: 0.0.40
codegen_flags: <defaults>
</compile_context>

<pallas_src>
import math

import jax
import jax.numpy as jnp
from jax.experimental import pallas as pl
from jax.experimental.pallas import tpu as pltpu

CLASSES_COUNT = 3
_LANES = 128
_TARGET_X_TILE_BYTES = 8 << 20   # ~8 MiB per input buffer (16 MiB double-buffered)
_VMEM_LIMIT_CAP = 48 << 20       # keep under v7x's 64 MiB physical VMEM
_MXU_NATIVE = (jnp.float32, jnp.bfloat16)


def _linear_kernel(x_ref, w_ref, b_ref, o_ref):
    # x_ref: (tile_r, Fk) native dtype, w_ref: (Fk, Ck) f32,
    # b_ref: (1, Ck) f32, o_ref: (tile_r, Ck) f32
    x = x_ref[...]
    if x.dtype not in _MXU_NATIVE:        # trace-time branch
        x = x.astype(jnp.float32)
    o_ref[...] = (
        jnp.dot(x, w_ref[...], preferred_element_type=jnp.float32) + b_ref[...]
    )


def create_forward(x, w, b):
    """Pallas equivalent of Create.forward.

    x: (batch, seq, in_features) any float dtype
    w: (in_features, 3)
    b: (3,)
    returns: (batch, seq, 3) float32
    """
    B, S, F = x.shape
    C = w.shape[1]
    R = B * S
    itemsize = jnp.dtype(x.dtype).itemsize
    w = w.astype(jnp.float32)
    b = b.astype(jnp.float32)

    # Lane-packing: fold `pack` logical rows into one lane-dense packed row
    # (Fk = lcm(F, 128) lanes) and use a block-diagonal weight so loads, the
    # MXU K dim, and stores are denser.  Works for any F, not just 128 % F == 0.
    pack = math.lcm(F, _LANES) // F
    if pack <= 1 or R % pack != 0:
        pack = 1

    rows = R // pack
    Fk = F * pack
    Ck = C * pack

    if pack > 1:
        # Block-diagonal replication of w (built once, host side):
        # wk[p*F + f, q*C + c] = w[f, c] * delta(p, q)
        wk = jnp.einsum(
            "fc,pq->pfqc", w, jnp.eye(pack, dtype=jnp.float32)
        ).reshape(Fk, Ck)
        bk = jnp.tile(b, pack).reshape(1, Ck)
    else:
        wk = w
        bk = b.reshape(1, C)

    # Native dtype view of x; any needed cast happens inside the kernel.
    xk = x.reshape(rows, Fk)

    # Row tile sized from a byte budget; multiple of 8 (sublane) when partial.
    row_bytes = Fk * itemsize
    tile_r_target = max(8, (_TARGET_X_TILE_BYTES // max(row_bytes, 1)) // 8 * 8)
    tile_r = rows if rows <= tile_r_target else tile_r_target
    grid = (pl.cdiv(rows, tile_r),)

    # Scoped-VMEM budget: double-buffered x + out tiles, resident w/b, slack.
    x_tile_bytes = tile_r * Fk * itemsize
    out_tile_bytes = tile_r * Ck * 4
    wb_bytes = Fk * Ck * 4 + Ck * 4
    vmem_needed = 2 * (x_tile_bytes + out_tile_bytes + wb_bytes)
    vmem_limit = min(max(vmem_needed + (4 << 20), 16 << 20), _VMEM_LIMIT_CAP)

    cost = pl.CostEstimate(
        flops=2 * rows * Fk * Ck,
        transcendentals=0,
        bytes_accessed=rows * Fk * itemsize + rows * Ck * 4 + Fk * Ck * 4 + Ck * 4,
    )

    out = pl.pallas_call(
        _linear_kernel,
        out_shape=jax.ShapeDtypeStruct((rows, Ck), jnp.float32),
        grid=grid,
        in_specs=[
            pl.BlockSpec((tile_r, Fk), lambda i: (i, 0)),   # streamed row tiles
            pl.BlockSpec((Fk, Ck), lambda i: (0, 0)),        # resident weight
            pl.BlockSpec((1, Ck), lambda i: (0, 0)),         # resident bias
        ],
        out_specs=pl.BlockSpec((tile_r, Ck), lambda i: (i, 0)),
        compiler_params=pltpu.CompilerParams(
            # "parallel": no-op on single-TC chips, shards the row axis across
            # v7x's two TensorCores.
            dimension_semantics=("parallel",),
            vmem_limit_bytes=vmem_limit,
        ),
        cost_estimate=cost,
    )(xk, wk, bk)

    return out.reshape(B, S, C)


if __name__ == "__main__":
    key = jax.random.PRNGKey(0)
    k_x, k_w, k_b, k_x2, k_w2, k_x3 = jax.random.split(key, 6)

    # --- main check: F=32 exercises the 4-rows-per-vreg lane-packed path ---
    batch, seq, in_features = 2, 8, 32
    x = jax.random.normal(k_x, (batch, seq, in_features), dtype=jnp.float32)
    w = jax.random.normal(k_w, (in_features, CLASSES_COUNT), dtype=jnp.float32) * 0.1
    b = jax.random.normal(k_b, (CLASSES_COUNT,), dtype=jnp.float32) * 0.1

    y = create_forward(x, w, b)
    jax.block_until_ready(y)

    y_ref = jnp.einsum("bsf,fc->bsc", x, w) + b
    assert y.shape == (batch, seq, CLASSES_COUNT)
    assert y.dtype == jnp.float32
    assert jnp.allclose(y, y_ref, atol=1e-5, rtol=1e-5)

    # --- secondary check: F=48 now exercises the lcm-packed path (pack=8) ---
    x2 = jax.random.normal(k_x2, (batch, seq, 48), dtype=jnp.float32)
    w2 = jax.random.normal(k_w2, (48, CLASSES_COUNT), dtype=jnp.float32) * 0.1
    y2 = create_forward(x2, w2, b)
    jax.block_until_ready(y2)
    y2_ref = jnp.einsum("bsf,fc->bsc", x2, w2) + b
    assert jnp.allclose(y2, y2_ref, atol=1e-5, rtol=1e-5)

    # --- tertiary check: bf16 input takes the no-cast MXU-native path ---
    x3 = jax.random.normal(k_x3, (batch, seq, in_features), dtype=jnp.bfloat16)
    y3 = create_forward(x3, w, b)
    jax.block_until_ready(y3)
    y3_ref = jnp.einsum("bsf,fc->bsc", x3.astype(jnp.float32), w) + b
    assert y3.dtype == jnp.float32
    assert jnp.allclose(y3, y3_ref, atol=2e-2, rtol=2e-2)

    print("KERNEL_OK")
</pallas_src>

<mosaic_0001>
module attributes {stable_mosaic.version = 11 : i64} {
  func.func @_linear_kernel(%arg0: i32, %arg1: memref<4x128xf32, #tpu.memory_space<vmem>>, %arg2: memref<128x12xf32, #tpu.memory_space<vmem>>, %arg3: memref<1x12xf32, #tpu.memory_space<vmem>>, %arg4: memref<4x12xf32, #tpu.memory_space<vmem>>) attributes {dimension_semantics = [#tpu.dimension_semantics<parallel>], iteration_bounds = array<i64: 1>, scalar_prefetch = 0 : i64, scratch_operands = 0 : i64, tpu.core_type = #tpu.core_type<tc>, window_params = [{transform_indices = @transform_0, window_bounds = array<i64: 4, 128>}, {pipeline_mode = #tpu.pipeline_mode<synchronous>, transform_indices = @transform_1, window_bounds = array<i64: 128, 12>}, {pipeline_mode = #tpu.pipeline_mode<synchronous>, transform_indices = @transform_2, window_bounds = array<i64: 1, 12>}, {transform_indices = @transform_3, window_bounds = array<i64: 4, 12>}]} {
    %c0 = arith.constant 0 : index
    %c0_0 = arith.constant 0 : index
    %0 = vector.load %arg1[%c0, %c0_0] : memref<4x128xf32, #tpu.memory_space<vmem>>, vector<4x128xf32>
    %c0_1 = arith.constant 0 : index
    %c0_2 = arith.constant 0 : index
    %1 = vector.load %arg2[%c0_1, %c0_2] : memref<128x12xf32, #tpu.memory_space<vmem>>, vector<128x12xf32>
    %cst = arith.constant dense<0.000000e+00> : vector<4x12xf32>
    %2 = tpu.matmul %0, %1, %cst {dimension_numbers = #tpu.dot_dimension_numbers<[1], [0], [0], [1], [0, 0, 1, 1], [], []>} : vector<4x128xf32>, vector<128x12xf32>, vector<4x12xf32> -> vector<4x12xf32>
    %c0_3 = arith.constant 0 : index
    %c0_4 = arith.constant 0 : index
    %3 = vector.load %arg3[%c0_3, %c0_4] : memref<1x12xf32, #tpu.memory_space<vmem>>, vector<1x12xf32>
    %4 = vector.broadcast %3 : vector<1x12xf32> to vector<4x12xf32>
    %5 = arith.addf %2, %4 : vector<4x12xf32>
    %c0_5 = arith.constant 0 : index
    %c0_6 = arith.constant 0 : index
    %6 = vector.load %arg4[%c0_5, %c0_6] : memref<4x12xf32, #tpu.memory_space<vmem>>, vector<4x12xf32>
    tpu.vector_store %arg4[%c0_5, %c0_6], %5 {strides = array<i32>} : memref<4x12xf32, #tpu.memory_space<vmem>>, vector<4x12xf32>,
    return
  }
  func.func @transform_0(%arg0: i32) -> (i32, i32) {
    %c0_i32 = arith.constant 0 : i32
    %c0_i32_0 = arith.constant 0 : i32
    return %arg0, %c0_i32 : i32, i32
  }
  func.func @transform_1(%arg0: i32) -> (i32, i32) {
    %c0_i32 = arith.constant 0 : i32
    %c0_i32_0 = arith.constant 0 : i32
    %c0_i32_1 = arith.constant 0 : i32
    return %c0_i32, %c0_i32_0 : i32, i32
  }
  func.func @transform_2(%arg0: i32) -> (i32, i32) {
    %c0_i32 = arith.constant 0 : i32
    %c0_i32_0 = arith.constant 0 : i32
    %c0_i32_1 = arith.constant 0 : i32
    return %c0_i32, %c0_i32_0 : i32, i32
  }
  func.func @transform_3(%arg0: i32) -> (i32, i32) {
    %c0_i32 = arith.constant 0 : i32
    %c0_i32_0 = arith.constant 0 : i32
    return %arg0, %c0_i32 : i32, i32
  }
}

</mosaic_0001>

<bundles_post_ra>
// kernel: tpu_custom_call.1
= control target key start
LH: loop header
LB: loop body
LE: loop exit
PB: predicated region body
PF: predicated region fallthrough
CT: control target
= control target key end

     0   :  { %v203_v1 = vmov 0.0   ;;  %vm204_vm0 = vmmov 0   ;;  %s283_s0 = inlined_call_operand.vmem [shape: f32[4,128], index: 0, kind: input, shape index: {}]   ;;  %s284_s1 = inlined_call_operand.vmem [shape: f32[128,12], index: 1, kind: input, shape index: {}]   ;;  %s285_s2 = inlined_call_operand.vmem [shape: f32[1,12], index: 2, kind: input, shape index: {}]   ;;  %s286_s3 = inlined_call_operand.hbm [shape: f32[4,12], index: 3, kind: output, shape index: {}]  }
   0x1   :  { %v31_v0 = vld [vmem:[%s284_s1 + $0x78] sm:$0xff]  ;;  %143 = vmatprep.subr.mxu0 %v203_v1  ;;  %v30_v2 = vld [vmem:[%s284_s1 + $0x70] sm:$0xff]  ;;  %175 = vmatprep.mubr.msk.f32.mxu0 %vm204_vm0, %v203_v1  ;;  %v29_v3 = vld [vmem:[%s284_s1 + $0x68] sm:$0xff] }
   0x2   :  { %144 = vmatpush3.msra.mxu0 %v31_v0  ;;  %v28_v4 = vld [vmem:[%s284_s1 + $0x60] sm:$0xff] }
   0x3   :  { %145 = vmatprep.subr.mxu0 %v203_v1 }
   0x4   :  { %146 = vmatpush3.msra.mxu0 %v30_v2 }
   0x5   :  { %147 = vmatprep.subr.mxu0 %v203_v1 }
   0x6   :  { %148 = vmatpush3.msra.mxu0 %v29_v3 }
   0x7   :  { %8 = vsyncpa [#allocation3], 0  ;;  %149 = vmatprep.subr.mxu0 %v203_v1  ;;  %v27_v5 = vld [vmem:[%s284_s1 + $0x58] sm:$0xff]  ;;  %v26_v6 = vld [vmem:[%s284_s1 + $0x50] sm:$0xff]  ;;  %s205_s21 = smov [#allocation2]   ;;  %vm109_vm1 = vcmask 93184  }
   0x8   :  { %150 = vmatpush3.msra.mxu0 %v28_v4  ;;  %v25_v7 = vld [vmem:[%s284_s1 + $0x48] sm:$0xff]  ;;  %v24_v8 = vld [vmem:[%s284_s1 + $0x40] sm:$0xff]  ;;  %v23_v9 = vld [vmem:[%s284_s1 + $0x38] sm:$0xff]  ;;  %s117_s22 = sshll.u32 %s205_s21, 4  ;;  %s118_s22 = int_to_ptr.vmem [resolvable:$true] %s117_s22 }
   0x9   :  { %151 = vmatprep.subr.mxu0 %v203_v1  ;;  %v22_v10 = vld [vmem:[%s284_s1 + $0x30] sm:$0xff]  ;;  %v21_v11 = vld [vmem:[%s284_s1 + $0x28] sm:$0xff]  ;;  %v20_v12 = vld [vmem:[%s284_s1 + $0x20] sm:$0xff]  ;;  %p186_p1 = scmp.lt.s32.totalorder %s118_s22, %s118_s22 }
   0xa   :  { %152 = vmatpush3.msra.mxu0 %v27_v5  ;;  %v19_v13 = vld [vmem:[%s284_s1 + $0x18] sm:$0xff]  ;;  %v18_v14 = vld [vmem:[%s284_s1 + $0x10] sm:$0xff]  ;;  %v17_v15 = vld [vmem:[%s284_s1 + $0x8] sm:$0xff] }
   0xb   :  { %153 = vmatprep.subr.mxu0 %v203_v1  ;;  %v16_v16 = vld [vmem:[%s284_s1] sm:$0xff]  ;;  %s181_s1 = scalar_lea.vmem %s118_s22, 64 }
   0xc   :  { %154 = vmatpush3.msra.mxu0 %v26_v6  ;;  %v15_v17 = vld [vmem:[%s283_s0] sm:$0xf]  ;;  %p182_p0 = scmp.ne.s32.totalorder %s118_s22, %s181_s1  ;;  %p187_p2 = scmp.lt.s32.totalorder %s181_s1, %s181_s1 }
   0xd   :  { %155 = vmatprep.subr.mxu0 %v203_v1  ;;  %v125_v18 = vld [vmem:[%s285_s2] ss:$0 sm:$0xff] }
   0xe   :  { %156 = vmatpush3.msra.mxu0 %v25_v7  ;;  %p188_p3 = por %p187_p2, %p186_p1 }
   0xf   :  { %157 = vmatprep.subr.mxu0 %v203_v1 }
  0x10   :  { %158 = vmatpush3.msra.mxu0 %v24_v8  ;;  %p189_p4 = pnand %p188_p3, %p182_p0 }
  0x11   :  { %159 = vmatprep.subr.mxu0 %v203_v1 }
  0x12   :  { %160 = vmatpush3.msra.mxu0 %v23_v9 }
  0x13   :  { %161 = vmatprep.subr.mxu0 %v203_v1 }
  0x14   :  { %162 = vmatpush3.msra.mxu0 %v22_v10 }
  0x15   :  { %163 = vmatprep.subr.mxu0 %v203_v1 }
  0x16   :  { %164 = vmatpush3.msra.mxu0 %v21_v11 }
  0x17   :  { %165 = vmatprep.subr.mxu0 %v203_v1 }
  0x18   :  { %166 = vmatpush3.msra.mxu0 %v20_v12 }
  0x19   :  { %167 = vmatprep.subr.mxu0 %v203_v1 }
  0x1a   :  { %168 = vmatpush3.msra.mxu0 %v19_v13 }
  0x1b   :  { %169 = vmatprep.subr.mxu0 %v203_v1 }
  0x1c   :  { %170 = vmatpush3.msra.mxu0 %v18_v14 }
  0x1d   :  { %171 = vmatprep.subr.mxu0 %v203_v1 }
  0x1e   :  { %172 = vmatpush3.msra.mxu0 %v17_v15 }
  0x1f   :  { %173 = vmatprep.subr.mxu0 %v203_v1 }
  0x20   :  { %174 = vmatpush3.msra.mxu0 %v16_v16 }
  0x21   :  { %176 = vmatmul.mubr.f32.vlgmr.msra.gmra.mxu0 %v15_v17 }
  0xe1   :  { %v105_v19 = vpop.f32.mrf.mxu0 }
  0xe2   :  { %v106_v20 = vadd.f32 %v125_v18, %v105_v19 }
  0xe3   :  { %v177_v21 = vpop.f32.mrf.mxu0 }
  0xe4   :  { %110 = vst.msk [vmem:[#allocation2] sm:$0xf] %vm109_vm1, %v106_v20 }
  0xe5   :  { %192 = shalt.err (!%p189_p4)
}
  0xe6   :  { %120 = dma.vmem_to_hbm [thread:$0]  %s118_s22, 64, %s286_s3, [#allocation3]  }
  0xe7   :  { %201 = dma.done.wait [#allocation3], 64  }
  0xe8   :  { %202 = vsyncadd [#allocation3], 4294967232 }
  0xe9   :  { %124 = vsyncpa [#allocation3], 1 }

</bundles_post_ra>
